<compile_context>
chip_gen: v6e
topology: v6e:2x2x1
jax: 0.10.0
libtpu: 0.0.40
codegen_flags: <defaults>
</compile_context>

<pallas_src>
import functools

import jax
import jax.numpy as jnp
from jax import lax
from jax.experimental import pallas as pl
from jax.experimental.pallas import tpu as pltpu

_EPS = 1e-12            # F.normalize default
_EPS_SQ = _EPS * _EPS   # clamp applied to the *sum of squares*


def _cosface_kernel(x_ref, w_ref, invw_ref, label_ref, o_ref, *,
                    sm, tile_c, training):
    # x_ref:     (TB, D)   batch tile, pre-scaled by s / max(||x||, eps), MXU dtype
    # w_ref:     (TC, D)   class tile of the raw weight, MXU dtype
    # invw_ref:  (1, TC)   1 / max(||w||, eps), f32, lane-major
    # label_ref: (TB, 1)   int32 labels
    # o_ref:     (TB, TC)  f32 output tile (lane-dense: TC is a multiple of 128)

    # NT matmul on the MXU with bf16 operands, f32 accumulation.  No in-kernel
    # transpose, no in-kernel normalization.
    raw = lax.dot_general(x_ref[...], w_ref[...], (((1,), (1,)), ((), ())),
                          preferred_element_type=jnp.float32)

    # scaled == s * cosine for this tile (s and 1/||x|| folded into x, 1/||w||
    # streamed as a precomputed lane-major row).
    scaled = raw * invw_ref[...]

    if training:
        j = pl.program_id(0)  # class-tile index (outer grid axis)
        col_ids = lax.broadcasted_iota(jnp.int32, scaled.shape, 1)
        local_lab = label_ref[...] - j * tile_c          # (TB, 1) shift, not full-tile add
        o_ref[...] = jnp.where(col_ids == local_lab, scaled - sm, scaled)
    else:
        o_ref[...] = scaled - sm


def _device_info():
    """Best-effort chip query: (multi_tensorcore, physical_vmem_bytes, kind)."""
    kind = ""
    try:
        kind = str(getattr(jax.devices()[0], "device_kind", "")).lower()
    except Exception:
        pass
    multi_tc = ("v7" in kind) or ("v4" in kind) or ("v5p" in kind)
    try:
        vmem_cap = int(pltpu.get_tpu_info().vmem_capacity_bytes)
    except Exception:
        # Conservative fallbacks: 64 MiB on v7x, 128 MiB elsewhere.
        vmem_cap = (64 << 20) if "v7" in kind else (128 << 20)
    return multi_tc, vmem_cap, kind


def _tile_vmem_bytes(tile_b, tile_c, D, w_item, x_item):
    """VMEM needed for one pipelined step, including in-kernel f32 temporaries."""
    return (2 * tile_c * D * w_item        # weight double buffer
            + 2 * tile_b * D * x_item      # x double buffer
            + 2 * tile_b * tile_c * 4      # output double buffer (f32)
            + 2 * tile_b * tile_c * 4      # raw / scaled f32 temporaries
            + 2 * tile_c * 4               # inv-norm row double buffer
            + 2 * tile_b * 4               # labels
            + (1 << 16))                   # slack


def _pick_tiles(B, C, D, w_item, x_item, budget, multi_tc):
    """Choose (tile_b, tile_c) from D, dtypes and the per-chip VMEM budget."""
    tile_b = B if B <= 256 else 256
    c_pad_full = pl.cdiv(C, 128) * 128

    def fits(tc):
        return _tile_vmem_bytes(tile_b, tc, D, w_item, x_item) <= budget

    # Prefer 512/1024 over huge tiles; on single-TC chips also consider taking
    # the whole padded C as one tile (no per-step overhead, weight resident).
    candidates = [1024, 512, 256, 128]
    if not multi_tc:
        candidates = [c_pad_full] + candidates

    for cand in candidates:
        if cand > c_pad_full or not fits(cand):
            continue
        padded = pl.cdiv(C, cand) * cand
        steps = padded // cand
        waste_ok = (padded - C) * 20 <= C or steps == 1
        if multi_tc:
            # 2-TC chips: >= 2 tiles per core and an even count for balance.
            if steps >= 4 and steps % 2 == 0 and waste_ok:
                return tile_b, cand
        elif waste_ok:
            return tile_b, cand

    # Relaxed fallback: largest candidate that fits the budget at all.
    for cand in candidates:
        if cand <= c_pad_full and fits(cand):
            return tile_b, cand
    return tile_b, 128


def cosine_margin_product(x, weight, label, *, s=30.0, m=0.35, training=True,
                          mxu_dtype=jnp.bfloat16, tile_c=None):
    """x: (B, D), weight: (C, D), label: (B,) int -> (B, C) float32 logits."""
    B, D = x.shape
    C, D2 = weight.shape
    assert D == D2, "in_feature mismatch"

    multi_tc, vmem_cap, kind = _device_info()
    vmem_scope_cap = int(0.75 * vmem_cap)        # never request beyond physical VMEM
    tile_budget = vmem_scope_cap // 2

    w_item = jnp.dtype(mxu_dtype).itemsize
    x_item = jnp.dtype(mxu_dtype).itemsize

    tile_b, auto_tc = _pick_tiles(B, C, D, w_item, x_item, tile_budget, multi_tc)
    if tile_c is None:
        tile_c = auto_tc
    assert tile_c % 128 == 0, "tile_c must be a multiple of 128"

    # Feature side: fold s / max(||x||, eps) into x ONCE (hoisted out of the
    # class loop), then cast to the MXU dtype.
    x32 = x.astype(jnp.float32)
    sx_inv = s * lax.rsqrt(
        jnp.maximum(jnp.sum(x32 * x32, axis=-1, keepdims=True), _EPS_SQ))
    x_pre = (x32 * sx_inv).astype(mxu_dtype)

    # Class side: per-class inverse norms precomputed once from the ORIGINAL
    # precision weight as a lane-major (1, C) f32 row; the matmul operand is a
    # bf16 copy.  TODO(synk): in a real model, store/pass the weight as bf16 so
    # this cast (and its extra HBM pass) disappears.
    w32 = weight.astype(jnp.float32)
    inv_w = lax.rsqrt(
        jnp.maximum(jnp.sum(w32 * w32, axis=-1, keepdims=True), _EPS_SQ)).reshape(1, C)
    w_mxu = weight.astype(mxu_dtype)

    # Pad classes / batch AFTER any dtype conversion (pad rows stay exact zeros;
    # inv_w padded with zeros so padded columns output exactly 0 before slicing).
    c_pad = pl.cdiv(C, tile_c) * tile_c
    b_pad = pl.cdiv(B, tile_b) * tile_b
    if c_pad != C:
        w_mxu = jnp.pad(w_mxu, ((0, c_pad - C), (0, 0)))
        inv_w = jnp.pad(inv_w, ((0, 0), (0, c_pad - C)))
    label2d = label.astype(jnp.int32).reshape(B, 1)
    if b_pad != B:
        x_pre = jnp.pad(x_pre, ((0, b_pad - B), (0, 0)))
        label2d = jnp.pad(label2d, ((0, b_pad - B), (0, 0)), constant_values=-1)

    nc = c_pad // tile_c
    nb = b_pad // tile_b
    # Class axis OUTER so the (tile_c, D) weight tile stays resident while the
    # (smaller) batch tiles stream underneath it.
    grid = (nc, nb)

    kernel = functools.partial(_cosface_kernel, sm=float(s) * float(m),
                               tile_c=tile_c, training=training)

    # Always set the scoped-VMEM limit (v5e default is only 16 MiB), sized from
    # the corrected estimate and capped below physical VMEM (64 MiB on v7x).
    vmem_need = _tile_vmem_bytes(tile_b, tile_c, D, w_item, x_item)
    vmem_limit = min(max(int(vmem_need * 1.5), 24 << 20), vmem_scope_cap)

    w_spec_kwargs = {}
    if "v7" in kind and tile_c <= 512 and nc > 2:
        # Small tiles drain ~2.3x faster on v7x's HBM; 3-deep buffering keeps
        # the weight stream saturated.
        w_spec_kwargs["pipeline_mode"] = pl.Buffered(3)

    out = pl.pallas_call(
        kernel,
        out_shape=jax.ShapeDtypeStruct((b_pad, c_pad), jnp.float32),
        grid_spec=pltpu.PrefetchScalarGridSpec(
            num_scalar_prefetch=0,
            grid=grid,
            in_specs=[
                pl.BlockSpec((tile_b, D), lambda j, i: (i, 0)),                  # x tile
                pl.BlockSpec((tile_c, D), lambda j, i: (j, 0), **w_spec_kwargs), # W tile
                pl.BlockSpec((1, tile_c), lambda j, i: (0, j)),                  # 1/||w||
                pl.BlockSpec((tile_b, 1), lambda j, i: (i, 0)),                  # labels
            ],
            out_specs=pl.BlockSpec((tile_b, tile_c), lambda j, i: (i, j)),
        ),
        compiler_params=pltpu.CompilerParams(
            dimension_semantics=("parallel", "parallel"),
            vmem_limit_bytes=int(vmem_limit)),
    )(x_pre, w_mxu, inv_w, label2d)

    if c_pad != C or b_pad != B:
        out = out[:B, :C]
    return out


def _reference(x, weight, label, s=30.0, m=0.35, training=True):
    """Faithful normalize-then-linear reference, matmul at HIGHEST precision."""
    eps = 1e-12
    xn = x / jnp.maximum(jnp.linalg.norm(x, axis=-1, keepdims=True), eps)
    wn = weight / jnp.maximum(jnp.linalg.norm(weight, axis=-1, keepdims=True), eps)
    cosine = jnp.dot(xn, wn.T, precision=lax.Precision.HIGHEST)
    if not training:
        return s * (cosine - m)
    one_hot = jax.nn.one_hot(label, weight.shape[0], dtype=cosine.dtype)
    return s * (cosine - one_hot * m)


if __name__ == "__main__":
    # Small TPU-friendly shapes consistent with the module:
    #   in_feature = 128 (module default), out_feature = 300 (exercises class
    #   padding / slicing), batch = 8.
    B, D, C = 8, 128, 300
    s_val, m_val = 30.0, 0.35

    key = jax.random.PRNGKey(0)
    kx, kw, kl = jax.random.split(key, 3)

    x = jax.random.normal(kx, (B, D), dtype=jnp.float32)

    # Deterministic xavier_uniform_-style init for (out_feature, in_feature).
    bound = (6.0 / (D + C)) ** 0.5
    weight = jax.random.uniform(kw, (C, D), minval=-bound, maxval=bound,
                                dtype=jnp.float32)
    label = jax.random.randint(kl, (B,), 0, C, dtype=jnp.int32)

    out_train = jax.block_until_ready(
        cosine_margin_product(x, weight, label, s=s_val, m=m_val, training=True))
    out_eval = jax.block_until_ready(
        cosine_margin_product(x, weight, label, s=s_val, m=m_val, training=False))
    assert out_train.shape == (B, C)
    assert out_eval.shape == (B, C)

    ref_train = _reference(x, weight, label, s=s_val, m=m_val, training=True)
    ref_eval = _reference(x, weight, label, s=s_val, m=m_val, training=False)

    # The kernel feeds bf16 operands to the MXU (f32 accumulation) while the
    # reference normalizes in f32 and runs at Precision.HIGHEST, so the two
    # mathematically identical computations differ by O(1e-2..1e-1) on the s=30
    # logit scale.  Tolerance chosen accordingly (intended tradeoff).
    assert jnp.allclose(out_train, ref_train, atol=0.2, rtol=5e-3), \
        "training-branch mismatch vs reference"
    assert jnp.allclose(out_eval, ref_eval, atol=0.2, rtol=5e-3), \
        "eval-branch mismatch vs reference"

    # Precision-independent structural check of the margin / one-hot logic:
    # train - eval must equal s*m*(1 - one_hot(label)) exactly (up to fp rounding).
    one_hot = jax.nn.one_hot(label, C, dtype=jnp.float32)
    assert jnp.allclose(out_train - out_eval, s_val * m_val * (1.0 - one_hot),
                        atol=1e-3), "margin application mismatch"

    print("KERNEL_OK")
</pallas_src>

<mosaic_0001>
module attributes {stable_mosaic.version = 11 : i64} {
  func.func @_cosface_kernel(%arg0: i32, %arg1: i32, %arg2: memref<8x128xbf16, #tpu.memory_space<vmem>>, %arg3: memref<384x128xbf16, #tpu.memory_space<vmem>>, %arg4: memref<1x384xf32, #tpu.memory_space<vmem>>, %arg5: memref<8x1xi32, #tpu.memory_space<vmem>>, %arg6: memref<8x384xf32, #tpu.memory_space<vmem>>) attributes {dimension_semantics = [#tpu.dimension_semantics<parallel>, #tpu.dimension_semantics<parallel>], iteration_bounds = array<i64: 1, 1>, scalar_prefetch = 0 : i64, scratch_operands = 0 : i64, tpu.core_type = #tpu.core_type<tc>, window_params = [{transform_indices = @transform_0, window_bounds = array<i64: 8, 128>}, {transform_indices = @transform_1, window_bounds = array<i64: 384, 128>}, {transform_indices = @transform_2, window_bounds = array<i64: 1, 384>}, {transform_indices = @transform_3, window_bounds = array<i64: 8, 1>}, {transform_indices = @transform_4, window_bounds = array<i64: 8, 384>}]} {
    %c0 = arith.constant 0 : index
    %c0_0 = arith.constant 0 : index
    %0 = vector.load %arg2[%c0, %c0_0] : memref<8x128xbf16, #tpu.memory_space<vmem>>, vector<8x128xbf16>
    %c0_1 = arith.constant 0 : index
    %c0_2 = arith.constant 0 : index
    %1 = vector.load %arg3[%c0_1, %c0_2] : memref<384x128xbf16, #tpu.memory_space<vmem>>, vector<384x128xbf16>
    %cst = arith.constant dense<0.000000e+00> : vector<8x384xf32>
    %2 = tpu.matmul %0, %1, %cst {dimension_numbers = #tpu.dot_dimension_numbers<[1], [1], [0], [0], [0, 0, 1, 0], [], []>} : vector<8x128xbf16>, vector<384x128xbf16>, vector<8x384xf32> -> vector<8x384xf32>
    %c0_3 = arith.constant 0 : index
    %c0_4 = arith.constant 0 : index
    %3 = vector.load %arg4[%c0_3, %c0_4] : memref<1x384xf32, #tpu.memory_space<vmem>>, vector<1x384xf32>
    %4 = vector.broadcast %3 : vector<1x384xf32> to vector<8x384xf32>
    %5 = arith.mulf %2, %4 : vector<8x384xf32>
    %6 = tpu.iota {dimensions = array<i32: 1>} : vector<8x384xi32>
    %c0_5 = arith.constant 0 : index
    %c0_6 = arith.constant 0 : index
    %7 = vector.load %arg5[%c0_5, %c0_6] : memref<8x1xi32, #tpu.memory_space<vmem>>, vector<8x1xi32>
    %c384_i32 = arith.constant 384 : i32
    %8 = arith.muli %arg0, %c384_i32 : i32
    %9 = vector.broadcast %8 : i32 to vector<8x1xi32>
    %10 = arith.subi %7, %9 : vector<8x1xi32>
    %11 = vector.broadcast %10 : vector<8x1xi32> to vector<8x384xi32>
    %12 = arith.cmpi eq, %6, %11 : vector<8x384xi32>
    %cst_7 = arith.constant 1.050000e+01 : f32
    %13 = vector.broadcast %cst_7 : f32 to vector<8x384xf32>
    %14 = arith.subf %5, %13 : vector<8x384xf32>
    %15 = arith.select %12, %14, %5 : vector<8x384xi1>, vector<8x384xf32>
    %c0_8 = arith.constant 0 : index
    %c0_9 = arith.constant 0 : index
    %16 = vector.load %arg6[%c0_8, %c0_9] : memref<8x384xf32, #tpu.memory_space<vmem>>, vector<8x384xf32>
    tpu.vector_store %arg6[%c0_8, %c0_9], %15 {strides = array<i32>} : memref<8x384xf32, #tpu.memory_space<vmem>>, vector<8x384xf32>,
    return
  }
  func.func @transform_0(%arg0: i32, %arg1: i32) -> (i32, i32) {
    %c0_i32 = arith.constant 0 : i32
    %c0_i32_0 = arith.constant 0 : i32
    return %arg1, %c0_i32 : i32, i32
  }
  func.func @transform_1(%arg0: i32, %arg1: i32) -> (i32, i32) {
    %c0_i32 = arith.constant 0 : i32
    %c0_i32_0 = arith.constant 0 : i32
    return %arg0, %c0_i32 : i32, i32
  }
  func.func @transform_2(%arg0: i32, %arg1: i32) -> (i32, i32) {
    %c0_i32 = arith.constant 0 : i32
    %c0_i32_0 = arith.constant 0 : i32
    return %c0_i32, %arg0 : i32, i32
  }
  func.func @transform_3(%arg0: i32, %arg1: i32) -> (i32, i32) {
    %c0_i32 = arith.constant 0 : i32
    %c0_i32_0 = arith.constant 0 : i32
    return %arg1, %c0_i32 : i32, i32
  }
  func.func @transform_4(%arg0: i32, %arg1: i32) -> (i32, i32) {
    %c0_i32 = arith.constant 0 : i32
    return %arg1, %arg0 : i32, i32
  }
}

</mosaic_0001>

<bundles_post_ra>
// kernel: tpu_custom_call.1
= control target key start
LH: loop header
LB: loop body
LE: loop exit
PB: predicated region body
PF: predicated region fallthrough
CT: control target
= control target key end

     0   :  { %9 = vsyncpa [#allocation3], 0  ;;  %s562_s0 = inlined_call_operand.vmem [shape: bf16[8,128], index: 0, kind: input, shape index: {}]   ;;  %s563_s1 = inlined_call_operand.hbm [shape: bf16[384,128], index: 1, kind: input, shape index: {}]   ;;  %s564_s2 = inlined_call_operand.vmem [shape: f32[1,384], index: 2, kind: input, shape index: {}]   ;;  %s565_s3 = inlined_call_operand.vmem [shape: s32[8,1], index: 3, kind: input, shape index: {}]   ;;  %s566_s4 = inlined_call_operand.hbm [shape: f32[8,384], index: 4, kind: output, shape index: {}]  }
   0x1   :  { %10 = vsyncpa [#allocation4], 0  ;;  %s515_s15 = smov [#allocation2]  }
   0x2   :  { %s18_s16 = sshll.u32 %s515_s15, 4  ;;  %s19_s16 = int_to_ptr.vmem [resolvable:$true] %s18_s16 }
   0x3   :  { %s479_s17 = scalar_lea.vmem %s19_s16, 3072  ;;  %p484_p1 = scmp.lt.s32.totalorder %s19_s16, %s19_s16 }
   0x4   :  { %p480_p0 = scmp.ne.s32.totalorder %s19_s16, %s479_s17  ;;  %p485_p2 = scmp.lt.s32.totalorder %s479_s17, %s479_s17 }
   0x6   :  { %p486_p3 = por %p485_p2, %p484_p1 }
   0x8   :  { %p487_p4 = pnand %p486_p3, %p480_p0 }
   0xa   :  { %490 = shalt.err (!%p487_p4)
}
   0xb   :  { %s516_s18 = smov 64   ;;  %s517_s19 = smov 4  }
   0xc   :  { %24 = dma.hbm_to_vmem [thread:$0]  %s563_s1, 3072, %s19_s16, [#allocation3], %s516_s18, %s516_s18, %s517_s19  }
   0xd   :  { %511 = dma.done.wait [#allocation3], 3072  }
   0xe   :  { %512 = vsyncadd [#allocation3], 4294964224  ;;  %v518_v0 = vmov 0.0   ;;  %vm519_vm0 = vmmov 0   ;;  %v520_v1 = vmov 0   ;;  %v447_v2 = vld [vmem:[#allocation2 + $0x78] sm:$0xff]   ;;  %v309_v28 = vlaneseq }
   0xf   :  { %419 = vmatprep.subr.bf16.mxu1 %v518_v0  ;;  %435 = vmatprep.mubr.msk.bf16.mxu1 %vm519_vm0, %v518_v0  ;;  %v448_v3 = vld [vmem:[#allocation2 + $0xb8] sm:$0xff]   ;;  %v450_v5 = vld [vmem:[#allocation2 + $0x70] sm:$0xff]   ;;  %v453_v8 = vld [vmem:[#allocation2 + $0x68] sm:$0xff]  }
  0x10   :  { %446 = vset.pattern.permute.xlu0 %v520_v1  ;;  %392 = vmatprep.subr.bf16.mxu0 %v447_v2  ;;  %v449_v4 = vld [vmem:[#allocation2 + $0x38] sm:$0xff]   ;;  %v451_v6 = vld [vmem:[#allocation2 + $0xb0] sm:$0xff]   ;;  %v454_v9 = vld [vmem:[#allocation2 + $0xa8] sm:$0xff]   ;;  %v310_v29 = vshrl.u32 %v309_v28, 7  ;;  %v328_v33 = vand.u32 127, %v309_v28 }
  0x11   :  { %420 = vmatpush3.bf16.xpose.msra.mxu1 %v448_v3  ;;  %393 = vmatpush3.bf16.xpose.msra.mxu0 %v449_v4  ;;  %v452_v7 = vld [vmem:[#allocation2 + $0x30] sm:$0xff]   ;;  %v455_v10 = vld [vmem:[#allocation2 + $0x28] sm:$0xff]   ;;  %v456_v11 = vld [vmem:[#allocation2 + $0x60] sm:$0xff]  }
  0x12   :  { %421 = vmatprep.subr.bf16.mxu1 %v518_v0  ;;  %394 = vmatprep.subr.bf16.mxu0 %v450_v5  ;;  %v457_v12 = vld [vmem:[#allocation2 + $0xa0] sm:$0xff]   ;;  %v459_v16 = vld [vmem:[#allocation2 + $0x58] sm:$0xff]   ;;  %v462_v19 = vld [vmem:[#allocation2 + $0x50] sm:$0xff]   ;;  %v319_v30 = vsub.s32 2, %v310_v29  ;;  %v311_v32 = vsub.s32 0, %v310_v29  ;;  %v315_v34 = vsub.s32 1, %v310_v29 }
  0x13   :  { %v458_v13 = vld [vmem:[#allocation2 + $0x20] sm:$0xff]   ;;  %v460_v17 = vld [vmem:[#allocation2 + $0x98] sm:$0xff]   ;;  %v463_v20 = vld [vmem:[#allocation2 + $0x90] sm:$0xff]   ;;  %v330_v37 = vadd.s32 256, %v328_v33  ;;  %v329_v43 = vadd.s32 128, %v328_v33 }
  0x14   :  { %v33_v14 = vld [vmem:[%s562_s0] sm:$0xf]  ;;  %v461_v18 = vld [vmem:[#allocation2 + $0x18] sm:$0xff]   ;;  %v464_v21 = vld [vmem:[#allocation2 + $0x10] sm:$0xff]  }
  0x15   :  { %v331_v15 = vld [vmem:[%s565_s3] sm:$0xff]  ;;  %408 = vmatprep.mubr.bf16.mxu0 %v33_v14  ;;  %v465_v22 = vld [vmem:[#allocation2 + $0x48] sm:$0xff]  }
  0x16   :  { %336 = vperm.xlu0 %446, %v331_v15   ;;  %v466_v23 = vld [vmem:[#allocation2 + $0x88] sm:$0xff]   ;;  %v468_v25 = vld [vmem:[#allocation2 + $0x40] sm:$0xff]  }
  0x17   :  { %v467_v24 = vld [vmem:[#allocation2 + $0x8] sm:$0xff]   ;;  %v469_v26 = vld [vmem:[#allocation2 + $0x80] sm:$0xff]  }
  0x18   :  { %v470_v27 = vld [vmem:[#allocation2] sm:$0xff]  }
  0x19   :  { %422 = vmatpush3.bf16.xpose.msra.mxu1 %v451_v6  ;;  %395 = vmatpush3.bf16.xpose.msra.mxu0 %v452_v7  ;;  %v307_v31 = vld [vmem:[%s564_s2] sm:$0x7]  ;;  %s521_s2 = smov [#allocation5]  }
  0x1a   :  { %423 = vmatprep.subr.bf16.mxu1 %v518_v0  ;;  %396 = vmatprep.subr.bf16.mxu0 %v453_v8  ;;  %v320_v35 = vrot.slane %v307_v31, %v319_v30  ;;  %v312_v36 = vrot.slane %v307_v31, %v311_v32  ;;  %v316_v40 = vrot.slane %v307_v31, %v315_v34  ;;  %s356_s25 = sshll.u32 %s521_s2, 4  ;;  %s357_s25 = int_to_ptr.vmem [resolvable:$true] %s356_s25 }
  0x1b   :  { %s491_s26 = scalar_lea.vmem %s357_s25, 384  ;;  %p496_p6 = scmp.lt.s32.totalorder %s357_s25, %s357_s25 }
  0x1c   :  { %p492_p5 = scmp.ne.s32.totalorder %s357_s25, %s491_s26  ;;  %p497_p7 = scmp.lt.s32.totalorder %s491_s26, %s491_s26 }
  0x1e   :  { %p498_p8 = por %p497_p7, %p496_p6 }
  0x20   :  { %p499_p9 = pnand %p498_p8, %p492_p5 }
  0x21   :  { %424 = vmatpush3.bf16.xpose.msra.mxu1 %v454_v9  ;;  %397 = vmatpush3.bf16.xpose.msra.mxu0 %v455_v10 }
  0x22   :  { %425 = vmatprep.subr.bf16.mxu1 %v518_v0  ;;  %398 = vmatprep.subr.bf16.mxu0 %v456_v11 }
  0x29   :  { %426 = vmatpush3.bf16.xpose.msra.mxu1 %v457_v12  ;;  %399 = vmatpush3.bf16.xpose.msra.mxu0 %v458_v13 }
  0x2a   :  { %427 = vmatprep.subr.bf16.mxu1 %v518_v0  ;;  %400 = vmatprep.subr.bf16.mxu0 %v459_v16 }
  0x31   :  { %428 = vmatpush3.bf16.xpose.msra.mxu1 %v460_v17  ;;  %401 = vmatpush3.bf16.xpose.msra.mxu0 %v461_v18 }
  0x32   :  { %429 = vmatprep.subr.bf16.mxu1 %v518_v0  ;;  %402 = vmatprep.subr.bf16.mxu0 %v462_v19 }
  0x39   :  { %430 = vmatpush3.bf16.xpose.msra.mxu1 %v463_v20  ;;  %403 = vmatpush3.bf16.xpose.msra.mxu0 %v464_v21 }
  0x3a   :  { %431 = vmatprep.subr.bf16.mxu1 %v518_v0  ;;  %404 = vmatprep.subr.bf16.mxu0 %v465_v22 }
  0x41   :  { %432 = vmatpush3.bf16.xpose.msra.mxu1 %v466_v23  ;;  %405 = vmatpush3.bf16.xpose.msra.mxu0 %v467_v24 }
  0x42   :  { %433 = vmatprep.subr.bf16.mxu1 %v518_v0  ;;  %406 = vmatprep.subr.bf16.mxu0 %v468_v25 }
  0x49   :  { %434 = vmatpush3.bf16.xpose.msra.mxu1 %v469_v26  ;;  %407 = vmatpush3.bf16.xpose.msra.mxu0 %v470_v27 }
  0x50   :  { %436 = vmatmul.mubr.bf16.vlgmr.msra.gmra.mxu1 %v33_v14  ;;  %409 = vmatmul.mubr.bf16.vlgmr.msra.gmra.mxu0 %v33_v14 }
  0x91   :  { %v337_v38 = vpop.permute.xlu0 %336 }
  0x92   :  { %vm340_vm1 = vcmp.eq.s32.totalorder %v330_v37, %v337_v38  ;;  %vm338_vm2 = vcmp.eq.s32.totalorder %v328_v33, %v337_v38  ;;  %vm339_vm3 = vcmp.eq.s32.totalorder %v329_v43, %v337_v38 }
 0x110   :  { %v301_v39 = vpop.f32.mrf.mxu1  ;;  %v260_v42 = vpop.f32.mrf.mxu0 }
 0x111   :  { %v326_v41 = vmul.f32 %v320_v35, %v301_v39  ;;  %v324_v44 = vmul.f32 %v312_v36, %v260_v42 }
 0x112   :  { %v437_v45 = vpop.f32.mrf.mxu1  ;;  %v262_v47 = vpop.f32.mrf.mxu0 }
 0x113   :  { %v391_v46 = vadd.f32 -10.5, %v326_v41  ;;  %v389_v48 = vadd.f32 -10.5, %v324_v44  ;;  %v325_v49 = vmul.f32 %v316_v40, %v262_v47 }
 0x114   :  { %v304_v50 = vpop.f32.mrf.mxu1  ;;  %v264_v52 = vpop.f32.mrf.mxu0 }
 0x115   :  { %v346_v51 = vsel %vm340_vm1, %v391_v46, %v326_v41  ;;  %v390_v53 = vadd.f32 -10.5, %v325_v49  ;;  %v344_v54 = vsel %vm338_vm2, %v389_v48, %v324_v44 }
 0x116   :  { %349 = vst [vmem:[#allocation5 + $0x10] sm:$0xff] %v346_v51  ;;  %v438_v55 = vpop.f32.mrf.mxu1  ;;  %347 = vst [vmem:[#allocation5] sm:$0xff] %v344_v54  ;;  %v265_v56 = vpop.f32.mrf.mxu0 }
 0x117   :  { %v345_v57 = vsel %vm339_vm3, %v390_v53, %v325_v49 }
 0x118   :  { %348 = vst [vmem:[#allocation5 + $0x8] sm:$0xff] %v345_v57 }
 0x119   :  { %502 = shalt.err (!%p499_p9)
}
 0x11a   :  { %359 = dma.vmem_to_hbm [thread:$0]  %s357_s25, 384, %s566_s4, [#allocation4]  }
 0x11b   :  { %513 = dma.done.wait [#allocation4], 384  }
 0x11c   :  { %514 = vsyncadd [#allocation4], 4294966912 }
 0x11d   :  { %363 = vsyncpa [#allocation3], 1 }
 0x11e   :  { %364 = vsyncpa [#allocation4], 1 }

</bundles_post_ra>
